<compile_context>
chip_gen: v7x
topology: tpu7x:2x2x1
jax: 0.10.0
libtpu: 0.0.40
codegen_flags: <defaults>
</compile_context>

<pallas_src>
import jax
import jax.numpy as jnp
from jax import lax
from jax.experimental import pallas as pl
from jax.experimental.pallas import tpu as pltpu

LN_EPS = 1e-5          # nn.LayerNorm default
LEAKY_SLOPE = 0.01     # nn.LeakyReLU default negative_slope
LANE = 128
SUBLANE = 8


def _round_up(n, m):
    return (n + m - 1) // m * m


def _make_fused_mlp_kernel(hidden_sizes):
    """Build a fused kernel for [Linear -> LayerNorm -> LeakyReLU]*N -> Linear.

    Ref order: x, (w, b, gamma, beta) per hidden layer, w_final, b_final, out.
    `hidden_sizes` are the TRUE (unpadded) hidden widths, baked in statically for the
    LayerNorm column mask / divisor.
    """
    hidden_sizes = tuple(int(h) for h in hidden_sizes)

    def kernel(*refs):
        x_ref = refs[0]
        o_ref = refs[-1]
        h = x_ref[...].astype(jnp.float32)
        idx = 1
        for h_true in hidden_sizes:
            w_ref, b_ref, g_ref, be_ref = refs[idx:idx + 4]
            idx += 4
            # Linear. Padded columns of w / b are zero -> padded columns of y are
            # exactly zero, so no pre-mask is needed before the row sums.
            y = jnp.dot(h, w_ref[...], preferred_element_type=jnp.float32) + b_ref[...]
            hp = y.shape[-1]
            inv_n = jnp.float32(1.0 / h_true)

            # LayerNorm over the TRUE features only.
            mean = jnp.sum(y, axis=-1, keepdims=True) * inv_n
            centered = y - mean
            if h_true != hp:
                # Padding leaks only via the (-mean) in padded columns: mask it out.
                col = lax.broadcasted_iota(jnp.int32, (1, hp), 1)
                centered = jnp.where(col < h_true, centered, 0.0)
            var = jnp.sum(centered * centered, axis=-1, keepdims=True) * inv_n
            y_hat = centered * lax.rsqrt(var + LN_EPS)       # rsqrt -> EUP slot
            y_ln = y_hat * g_ref[...] + be_ref[...]          # padded gamma/beta are zero

            # LeakyReLU (padded columns stay exactly zero).
            h = jnp.where(y_ln > 0, y_ln, LEAKY_SLOPE * y_ln)

        w_ref, b_ref = refs[idx], refs[idx + 1]
        out = jnp.dot(h, w_ref[...], preferred_element_type=jnp.float32) + b_ref[...]
        o_ref[...] = out.astype(o_ref.dtype)

    return kernel


def build_leap_forward(input_size, hidden_sizes, output_size, batch_tile=256):
    """Return forward(x, padded_params) running the whole MLP in one pallas_call."""
    in_pad = _round_up(input_size, LANE)
    hid_pad = [_round_up(h, LANE) for h in hidden_sizes]
    out_pad = _round_up(output_size, LANE)
    kernel = _make_fused_mlp_kernel(hidden_sizes)

    def forward(x, padded_params):
        batch = x.shape[0]
        # Batch tile: multiple of 8 sublanes, capped so double-buffered activation tiles
        # stay comfortably inside VMEM even on v7x (64 MiB).
        bt = min(_round_up(batch, SUBLANE), batch_tile)
        batch_pad = _round_up(batch, bt)

        x_pad = jnp.zeros((batch_pad, in_pad), jnp.float32)
        x_pad = x_pad.at[:batch, :input_size].set(x.astype(jnp.float32))

        flat_inputs = [x_pad]
        in_specs = [pl.BlockSpec((bt, in_pad), lambda i: (i, 0))]
        prev_pad = in_pad
        for (w, b, g, be), hp in zip(padded_params["hidden"], hid_pad):
            flat_inputs += [w, b, g, be]
            in_specs += [
                pl.BlockSpec((prev_pad, hp), lambda i: (0, 0)),
                pl.BlockSpec((1, hp), lambda i: (0, 0)),
                pl.BlockSpec((1, hp), lambda i: (0, 0)),
                pl.BlockSpec((1, hp), lambda i: (0, 0)),
            ]
            prev_pad = hp
        wf, bf = padded_params["final"]
        flat_inputs += [wf, bf]
        in_specs += [
            pl.BlockSpec((prev_pad, out_pad), lambda i: (0, 0)),
            pl.BlockSpec((1, out_pad), lambda i: (0, 0)),
        ]

        out = pl.pallas_call(
            kernel,
            out_shape=jax.ShapeDtypeStruct((batch_pad, out_pad), jnp.float32),
            grid=(batch_pad // bt,),
            in_specs=in_specs,
            out_specs=pl.BlockSpec((bt, out_pad), lambda i: (i, 0)),
            compiler_params=pltpu.CompilerParams(
                dimension_semantics=("parallel",)),
        )(*flat_inputs)
        return out[:batch, :output_size]

    return forward


def init_leap_params(key, input_size, hidden_sizes, output_size):
    """Arrays-only pytree (no string tags) so it passes cleanly through jax.jit."""
    hidden = []
    prev = input_size
    for h in hidden_sizes:
        key, kw, kb = jax.random.split(key, 3)
        bound = 1.0 / (prev ** 0.5)
        w = jax.random.uniform(kw, (prev, h), jnp.float32, -bound, bound)
        b = jax.random.uniform(kb, (h,), jnp.float32, -bound, bound)
        gamma = jnp.ones((h,), jnp.float32)
        beta = jnp.zeros((h,), jnp.float32)
        hidden.append((w, b, gamma, beta))
        prev = h
    key, kw, kb = jax.random.split(key, 3)
    bound = 1.0 / (prev ** 0.5)
    wf = jax.random.uniform(kw, (prev, output_size), jnp.float32, -bound, bound)
    bf = jax.random.uniform(kb, (output_size,), jnp.float32, -bound, bound)
    return {"hidden": hidden, "final": (wf, bf)}


def pad_leap_params(params, input_size, hidden_sizes, output_size):
    """One-time zero-padding of every feature dim to a multiple of 128 (lane-dense)."""
    in_pad = _round_up(input_size, LANE)
    hid_pad = [_round_up(h, LANE) for h in hidden_sizes]
    out_pad = _round_up(output_size, LANE)

    padded_hidden = []
    prev_true, prev_pad = input_size, in_pad
    for (w, b, g, be), h_true, hp in zip(params["hidden"], hidden_sizes, hid_pad):
        w_p = jnp.zeros((prev_pad, hp), jnp.float32).at[:prev_true, :h_true].set(w)
        b_p = jnp.zeros((1, hp), jnp.float32).at[0, :h_true].set(b)
        g_p = jnp.zeros((1, hp), jnp.float32).at[0, :h_true].set(g)
        be_p = jnp.zeros((1, hp), jnp.float32).at[0, :h_true].set(be)
        padded_hidden.append((w_p, b_p, g_p, be_p))
        prev_true, prev_pad = h_true, hp

    wf, bf = params["final"]
    wf_p = jnp.zeros((prev_pad, out_pad), jnp.float32).at[:prev_true, :output_size].set(wf)
    bf_p = jnp.zeros((1, out_pad), jnp.float32).at[0, :output_size].set(bf)
    return {"hidden": padded_hidden, "final": (wf_p, bf_p)}


def reference_forward(x, params):
    """Pure-JAX reference (unpadded) matching the PyTorch module semantics."""
    h = x
    for w, b, g, be in params["hidden"]:
        y = h @ w + b
        mean = jnp.mean(y, axis=-1, keepdims=True)
        var = jnp.mean((y - mean) ** 2, axis=-1, keepdims=True)
        y = (y - mean) / jnp.sqrt(var + LN_EPS) * g + be
        h = jnp.where(y > 0, y, LEAKY_SLOPE * y)
    wf, bf = params["final"]
    return h @ wf + bf


if __name__ == "__main__":
    key = jax.random.PRNGKey(0)
    batch = 8
    input_size = 32
    hidden_sizes = [64, 32]
    output_size = 16

    key, kx, kp = jax.random.split(key, 3)
    x = jax.random.normal(kx, (batch, input_size), jnp.float32)
    params = init_leap_params(kp, input_size, hidden_sizes, output_size)
    padded_params = pad_leap_params(params, input_size, hidden_sizes, output_size)

    forward = jax.jit(build_leap_forward(input_size, hidden_sizes, output_size))
    out = jax.block_until_ready(forward(x, padded_params))

    ref = reference_forward(x, params)
    assert out.shape == (batch, output_size), out.shape
    assert jnp.allclose(out, ref, atol=1e-4, rtol=1e-4), "mismatch vs reference"

    print("KERNEL_OK")
</pallas_src>

<mosaic_0001>
module attributes {stable_mosaic.version = 11 : i64} {
  func.func @kernel(%arg0: i32, %arg1: memref<8x128xf32, #tpu.memory_space<vmem>>, %arg2: memref<128x128xf32, #tpu.memory_space<vmem>>, %arg3: memref<1x128xf32, #tpu.memory_space<vmem>>, %arg4: memref<1x128xf32, #tpu.memory_space<vmem>>, %arg5: memref<1x128xf32, #tpu.memory_space<vmem>>, %arg6: memref<128x128xf32, #tpu.memory_space<vmem>>, %arg7: memref<1x128xf32, #tpu.memory_space<vmem>>, %arg8: memref<1x128xf32, #tpu.memory_space<vmem>>, %arg9: memref<1x128xf32, #tpu.memory_space<vmem>>, %arg10: memref<128x128xf32, #tpu.memory_space<vmem>>, %arg11: memref<1x128xf32, #tpu.memory_space<vmem>>, %arg12: memref<8x128xf32, #tpu.memory_space<vmem>>) attributes {dimension_semantics = [#tpu.dimension_semantics<parallel>], iteration_bounds = array<i64: 1>, scalar_prefetch = 0 : i64, scratch_operands = 0 : i64, tpu.core_type = #tpu.core_type<tc>, window_params = [{transform_indices = @transform_0, window_bounds = array<i64: 8, 128>}, {pipeline_mode = #tpu.pipeline_mode<synchronous>, transform_indices = @transform_1, window_bounds = array<i64: 128, 128>}, {pipeline_mode = #tpu.pipeline_mode<synchronous>, transform_indices = @transform_2, window_bounds = array<i64: 1, 128>}, {pipeline_mode = #tpu.pipeline_mode<synchronous>, transform_indices = @transform_3, window_bounds = array<i64: 1, 128>}, {pipeline_mode = #tpu.pipeline_mode<synchronous>, transform_indices = @transform_4, window_bounds = array<i64: 1, 128>}, {pipeline_mode = #tpu.pipeline_mode<synchronous>, transform_indices = @transform_5, window_bounds = array<i64: 128, 128>}, {pipeline_mode = #tpu.pipeline_mode<synchronous>, transform_indices = @transform_6, window_bounds = array<i64: 1, 128>}, {pipeline_mode = #tpu.pipeline_mode<synchronous>, transform_indices = @transform_7, window_bounds = array<i64: 1, 128>}, {pipeline_mode = #tpu.pipeline_mode<synchronous>, transform_indices = @transform_8, window_bounds = array<i64: 1, 128>}, {pipeline_mode = #tpu.pipeline_mode<synchronous>, transform_indices = @transform_9, window_bounds = array<i64: 128, 128>}, {pipeline_mode = #tpu.pipeline_mode<synchronous>, transform_indices = @transform_10, window_bounds = array<i64: 1, 128>}, {transform_indices = @transform_11, window_bounds = array<i64: 8, 128>}]} {
    %c0 = arith.constant 0 : index
    %c0_0 = arith.constant 0 : index
    %0 = vector.load %arg1[%c0, %c0_0] : memref<8x128xf32, #tpu.memory_space<vmem>>, vector<8x128xf32>
    %c0_1 = arith.constant 0 : index
    %c0_2 = arith.constant 0 : index
    %1 = vector.load %arg2[%c0_1, %c0_2] : memref<128x128xf32, #tpu.memory_space<vmem>>, vector<128x128xf32>
    %cst = arith.constant dense<0.000000e+00> : vector<8x128xf32>
    %2 = tpu.matmul %0, %1, %cst {dimension_numbers = #tpu.dot_dimension_numbers<[1], [0], [0], [1], [0, 0, 1, 1], [], []>} : vector<8x128xf32>, vector<128x128xf32>, vector<8x128xf32> -> vector<8x128xf32>
    %c0_3 = arith.constant 0 : index
    %c0_4 = arith.constant 0 : index
    %3 = vector.load %arg3[%c0_3, %c0_4] : memref<1x128xf32, #tpu.memory_space<vmem>>, vector<1x128xf32>
    %4 = vector.broadcast %3 : vector<1x128xf32> to vector<8x128xf32>
    %5 = arith.addf %2, %4 : vector<8x128xf32>
    %cst_5 = arith.constant dense<0.000000e+00> : vector<8xf32>
    %6 = vector.multi_reduction <add>, %5, %cst_5 [1] : vector<8x128xf32> to vector<8xf32>
    %7 = vector.shape_cast %6 : vector<8xf32> to vector<8x1xf32>
    %cst_6 = arith.constant 1.562500e-02 : f32
    %8 = vector.broadcast %cst_6 : f32 to vector<8x1xf32>
    %9 = arith.mulf %7, %8 : vector<8x1xf32>
    %10 = vector.broadcast %9 : vector<8x1xf32> to vector<8x128xf32>
    %11 = arith.subf %5, %10 : vector<8x128xf32>
    %12 = tpu.iota {dimensions = array<i32: 1>} : vector<1x128xi32>
    %c64_i32 = arith.constant 64 : i32
    %13 = vector.broadcast %c64_i32 : i32 to vector<1x128xi32>
    %14 = arith.cmpi slt, %12, %13 : vector<1x128xi32>
    %cst_7 = arith.constant 0.000000e+00 : f32
    %15 = vector.shape_cast %14 : vector<1x128xi1> to vector<1x128xi1>
    %16 = vector.broadcast %15 : vector<1x128xi1> to vector<8x128xi1>
    %17 = vector.broadcast %cst_7 : f32 to vector<8x128xf32>
    %18 = arith.select %16, %11, %17 : vector<8x128xi1>, vector<8x128xf32>
    %19 = arith.mulf %18, %18 : vector<8x128xf32>
    %cst_8 = arith.constant dense<0.000000e+00> : vector<8xf32>
    %20 = vector.multi_reduction <add>, %19, %cst_8 [1] : vector<8x128xf32> to vector<8xf32>
    %21 = vector.shape_cast %20 : vector<8xf32> to vector<8x1xf32>
    %cst_9 = arith.constant 1.562500e-02 : f32
    %22 = vector.broadcast %cst_9 : f32 to vector<8x1xf32>
    %23 = arith.mulf %21, %22 : vector<8x1xf32>
    %cst_10 = arith.constant 9.99999974E-6 : f32
    %24 = vector.broadcast %cst_10 : f32 to vector<8x1xf32>
    %25 = arith.addf %23, %24 : vector<8x1xf32>
    %26 = math.rsqrt %25 : vector<8x1xf32>
    %27 = vector.broadcast %26 : vector<8x1xf32> to vector<8x128xf32>
    %28 = arith.mulf %18, %27 : vector<8x128xf32>
    %c0_11 = arith.constant 0 : index
    %c0_12 = arith.constant 0 : index
    %29 = vector.load %arg4[%c0_11, %c0_12] : memref<1x128xf32, #tpu.memory_space<vmem>>, vector<1x128xf32>
    %30 = vector.broadcast %29 : vector<1x128xf32> to vector<8x128xf32>
    %31 = arith.mulf %28, %30 : vector<8x128xf32>
    %c0_13 = arith.constant 0 : index
    %c0_14 = arith.constant 0 : index
    %32 = vector.load %arg5[%c0_13, %c0_14] : memref<1x128xf32, #tpu.memory_space<vmem>>, vector<1x128xf32>
    %33 = vector.broadcast %32 : vector<1x128xf32> to vector<8x128xf32>
    %34 = arith.addf %31, %33 : vector<8x128xf32>
    %cst_15 = arith.constant 0.000000e+00 : f32
    %35 = vector.broadcast %cst_15 : f32 to vector<8x128xf32>
    %36 = arith.cmpf ogt, %34, %35 : vector<8x128xf32>
    %cst_16 = arith.constant 0.00999999977 : f32
    %37 = vector.broadcast %cst_16 : f32 to vector<8x128xf32>
    %38 = arith.mulf %37, %34 : vector<8x128xf32>
    %39 = arith.select %36, %34, %38 : vector<8x128xi1>, vector<8x128xf32>
    %c0_17 = arith.constant 0 : index
    %c0_18 = arith.constant 0 : index
    %40 = vector.load %arg6[%c0_17, %c0_18] : memref<128x128xf32, #tpu.memory_space<vmem>>, vector<128x128xf32>
    %cst_19 = arith.constant dense<0.000000e+00> : vector<8x128xf32>
    %41 = tpu.matmul %39, %40, %cst_19 {dimension_numbers = #tpu.dot_dimension_numbers<[1], [0], [0], [1], [0, 0, 1, 1], [], []>} : vector<8x128xf32>, vector<128x128xf32>, vector<8x128xf32> -> vector<8x128xf32>
    %c0_20 = arith.constant 0 : index
    %c0_21 = arith.constant 0 : index
    %42 = vector.load %arg7[%c0_20, %c0_21] : memref<1x128xf32, #tpu.memory_space<vmem>>, vector<1x128xf32>
    %43 = vector.broadcast %42 : vector<1x128xf32> to vector<8x128xf32>
    %44 = arith.addf %41, %43 : vector<8x128xf32>
    %cst_22 = arith.constant dense<0.000000e+00> : vector<8xf32>
    %45 = vector.multi_reduction <add>, %44, %cst_22 [1] : vector<8x128xf32> to vector<8xf32>
    %46 = vector.shape_cast %45 : vector<8xf32> to vector<8x1xf32>
    %cst_23 = arith.constant 3.125000e-02 : f32
    %47 = vector.broadcast %cst_23 : f32 to vector<8x1xf32>
    %48 = arith.mulf %46, %47 : vector<8x1xf32>
    %49 = vector.broadcast %48 : vector<8x1xf32> to vector<8x128xf32>
    %50 = arith.subf %44, %49 : vector<8x128xf32>
    %51 = tpu.iota {dimensions = array<i32: 1>} : vector<1x128xi32>
    %c32_i32 = arith.constant 32 : i32
    %52 = vector.broadcast %c32_i32 : i32 to vector<1x128xi32>
    %53 = arith.cmpi slt, %51, %52 : vector<1x128xi32>
    %cst_24 = arith.constant 0.000000e+00 : f32
    %54 = vector.shape_cast %53 : vector<1x128xi1> to vector<1x128xi1>
    %55 = vector.broadcast %54 : vector<1x128xi1> to vector<8x128xi1>
    %56 = vector.broadcast %cst_24 : f32 to vector<8x128xf32>
    %57 = arith.select %55, %50, %56 : vector<8x128xi1>, vector<8x128xf32>
    %58 = arith.mulf %57, %57 : vector<8x128xf32>
    %cst_25 = arith.constant dense<0.000000e+00> : vector<8xf32>
    %59 = vector.multi_reduction <add>, %58, %cst_25 [1] : vector<8x128xf32> to vector<8xf32>
    %60 = vector.shape_cast %59 : vector<8xf32> to vector<8x1xf32>
    %cst_26 = arith.constant 3.125000e-02 : f32
    %61 = vector.broadcast %cst_26 : f32 to vector<8x1xf32>
    %62 = arith.mulf %60, %61 : vector<8x1xf32>
    %cst_27 = arith.constant 9.99999974E-6 : f32
    %63 = vector.broadcast %cst_27 : f32 to vector<8x1xf32>
    %64 = arith.addf %62, %63 : vector<8x1xf32>
    %65 = math.rsqrt %64 : vector<8x1xf32>
    %66 = vector.broadcast %65 : vector<8x1xf32> to vector<8x128xf32>
    %67 = arith.mulf %57, %66 : vector<8x128xf32>
    %c0_28 = arith.constant 0 : index
    %c0_29 = arith.constant 0 : index
    %68 = vector.load %arg8[%c0_28, %c0_29] : memref<1x128xf32, #tpu.memory_space<vmem>>, vector<1x128xf32>
    %69 = vector.broadcast %68 : vector<1x128xf32> to vector<8x128xf32>
    %70 = arith.mulf %67, %69 : vector<8x128xf32>
    %c0_30 = arith.constant 0 : index
    %c0_31 = arith.constant 0 : index
    %71 = vector.load %arg9[%c0_30, %c0_31] : memref<1x128xf32, #tpu.memory_space<vmem>>, vector<1x128xf32>
    %72 = vector.broadcast %71 : vector<1x128xf32> to vector<8x128xf32>
    %73 = arith.addf %70, %72 : vector<8x128xf32>
    %cst_32 = arith.constant 0.000000e+00 : f32
    %74 = vector.broadcast %cst_32 : f32 to vector<8x128xf32>
    %75 = arith.cmpf ogt, %73, %74 : vector<8x128xf32>
    %cst_33 = arith.constant 0.00999999977 : f32
    %76 = vector.broadcast %cst_33 : f32 to vector<8x128xf32>
    %77 = arith.mulf %76, %73 : vector<8x128xf32>
    %78 = arith.select %75, %73, %77 : vector<8x128xi1>, vector<8x128xf32>
    %c0_34 = arith.constant 0 : index
    %c0_35 = arith.constant 0 : index
    %79 = vector.load %arg10[%c0_34, %c0_35] : memref<128x128xf32, #tpu.memory_space<vmem>>, vector<128x128xf32>
    %cst_36 = arith.constant dense<0.000000e+00> : vector<8x128xf32>
    %80 = tpu.matmul %78, %79, %cst_36 {dimension_numbers = #tpu.dot_dimension_numbers<[1], [0], [0], [1], [0, 0, 1, 1], [], []>} : vector<8x128xf32>, vector<128x128xf32>, vector<8x128xf32> -> vector<8x128xf32>
    %c0_37 = arith.constant 0 : index
    %c0_38 = arith.constant 0 : index
    %81 = vector.load %arg11[%c0_37, %c0_38] : memref<1x128xf32, #tpu.memory_space<vmem>>, vector<1x128xf32>
    %82 = vector.broadcast %81 : vector<1x128xf32> to vector<8x128xf32>
    %83 = arith.addf %80, %82 : vector<8x128xf32>
    %c0_39 = arith.constant 0 : index
    %c0_40 = arith.constant 0 : index
    %84 = vector.load %arg12[%c0_39, %c0_40] : memref<8x128xf32, #tpu.memory_space<vmem>>, vector<8x128xf32>
    tpu.vector_store %arg12[%c0_39, %c0_40], %83 {strides = array<i32>} : memref<8x128xf32, #tpu.memory_space<vmem>>, vector<8x128xf32>,
    return
  }
  func.func @transform_0(%arg0: i32) -> (i32, i32) {
    %c0_i32 = arith.constant 0 : i32
    %c0_i32_0 = arith.constant 0 : i32
    return %arg0, %c0_i32 : i32, i32
  }
  func.func @transform_1(%arg0: i32) -> (i32, i32) {
    %c0_i32 = arith.constant 0 : i32
    %c0_i32_0 = arith.constant 0 : i32
    %c0_i32_1 = arith.constant 0 : i32
    return %c0_i32, %c0_i32_0 : i32, i32
  }
  func.func @transform_2(%arg0: i32) -> (i32, i32) {
    %c0_i32 = arith.constant 0 : i32
    %c0_i32_0 = arith.constant 0 : i32
    %c0_i32_1 = arith.constant 0 : i32
    return %c0_i32, %c0_i32_0 : i32, i32
  }
  func.func @transform_3(%arg0: i32) -> (i32, i32) {
    %c0_i32 = arith.constant 0 : i32
    %c0_i32_0 = arith.constant 0 : i32
    %c0_i32_1 = arith.constant 0 : i32
    return %c0_i32, %c0_i32_0 : i32, i32
  }
  func.func @transform_4(%arg0: i32) -> (i32, i32) {
    %c0_i32 = arith.constant 0 : i32
    %c0_i32_0 = arith.constant 0 : i32
    %c0_i32_1 = arith.constant 0 : i32
    return %c0_i32, %c0_i32_0 : i32, i32
  }
  func.func @transform_5(%arg0: i32) -> (i32, i32) {
    %c0_i32 = arith.constant 0 : i32
    %c0_i32_0 = arith.constant 0 : i32
    %c0_i32_1 = arith.constant 0 : i32
    return %c0_i32, %c0_i32_0 : i32, i32
  }
  func.func @transform_6(%arg0: i32) -> (i32, i32) {
    %c0_i32 = arith.constant 0 : i32
    %c0_i32_0 = arith.constant 0 : i32
    %c0_i32_1 = arith.constant 0 : i32
    return %c0_i32, %c0_i32_0 : i32, i32
  }
  func.func @transform_7(%arg0: i32) -> (i32, i32) {
    %c0_i32 = arith.constant 0 : i32
    %c0_i32_0 = arith.constant 0 : i32
    %c0_i32_1 = arith.constant 0 : i32
    return %c0_i32, %c0_i32_0 : i32, i32
  }
  func.func @transform_8(%arg0: i32) -> (i32, i32) {
    %c0_i32 = arith.constant 0 : i32
    %c0_i32_0 = arith.constant 0 : i32
    %c0_i32_1 = arith.constant 0 : i32
    return %c0_i32, %c0_i32_0 : i32, i32
  }
  func.func @transform_9(%arg0: i32) -> (i32, i32) {
    %c0_i32 = arith.constant 0 : i32
    %c0_i32_0 = arith.constant 0 : i32
    %c0_i32_1 = arith.constant 0 : i32
    return %c0_i32, %c0_i32_0 : i32, i32
  }
  func.func @transform_10(%arg0: i32) -> (i32, i32) {
    %c0_i32 = arith.constant 0 : i32
    %c0_i32_0 = arith.constant 0 : i32
    %c0_i32_1 = arith.constant 0 : i32
    return %c0_i32, %c0_i32_0 : i32, i32
  }
  func.func @transform_11(%arg0: i32) -> (i32, i32) {
    %c0_i32 = arith.constant 0 : i32
    %c0_i32_0 = arith.constant 0 : i32
    return %arg0, %c0_i32 : i32, i32
  }
}

</mosaic_0001>

<bundles_post_ra>
// kernel: forward.1
= control target key start
LH: loop header
LB: loop body
LE: loop exit
PB: predicated region body
PF: predicated region fallthrough
CT: control target
= control target key end

     0   :  { %16 = vsyncpa [#allocation3], 0  ;;  %s977_s0 = inlined_call_operand.vmem [shape: f32[8,128], index: 0, kind: input, shape index: {}]   ;;  %s978_s1 = inlined_call_operand.hbm [shape: f32[128,128], index: 1, kind: input, shape index: {}]   ;;  %s979_s2 = inlined_call_operand.vmem [shape: f32[1,128], index: 2, kind: input, shape index: {}]   ;;  %s980_s3 = inlined_call_operand.vmem [shape: f32[1,128], index: 3, kind: input, shape index: {}]   ;;  %s981_s4 = inlined_call_operand.vmem [shape: f32[1,128], index: 4, kind: input, shape index: {}]   ;;  %s982_s5 = inlined_call_operand.hbm [shape: f32[128,128], index: 5, kind: input, shape index: {}]   ;;  %s983_s6 = inlined_call_operand.vmem [shape: f32[1,128], index: 6, kind: input, shape index: {}]   ;;  %s984_s7 = inlined_call_operand.vmem [shape: f32[1,128], index: 7, kind: input, shape index: {}]   ;;  %s985_s8 = inlined_call_operand.vmem [shape: f32[1,128], index: 8, kind: input, shape index: {}]   ;;  %s986_s9 = inlined_call_operand.hbm [shape: f32[128,128], index: 9, kind: input, shape index: {}]   ;;  %s987_s10 = inlined_call_operand.vmem [shape: f32[1,128], index: 10, kind: input, shape index: {}]   ;;  %s988_s11 = inlined_call_operand.hbm [shape: f32[8,128], index: 11, kind: output, shape index: {}]  }
   0x1   :  { %17 = vsyncpa [#allocation6], 0 }
   0x2   :  { %18 = vsyncpa [#allocation4], 0  ;;  %s789_s17 = smov [#allocation5]   ;;  %s790_s19 = smov [#allocation2]  }
   0x3   :  { %s44_s18 = sshll.u32 %s789_s17, 4  ;;  %s26_s20 = sshll.u32 %s790_s19, 4  ;;  %s45_s18 = int_to_ptr.vmem [resolvable:$true] %s44_s18  ;;  %s858_s20 = int_to_ptr.vmem [resolvable:$true] %s26_s20 }
   0x4   :  { %s695_s23 = scalar_lea.hbm %s982_s5, 2048 }
   0x5   :  { %p696_p0 = scmp.ne.s32.totalorder %s982_s5, %s695_s23  ;;  %p699_p1 = scmp.lt.u32.totalorder %s695_s23, %s982_s5 }
   0x7   :  { %p701_p2 = pnand %p699_p1, %p696_p0 }
   0x9   :  { %704 = shalt.err (!%p701_p2)
}
   0xa   :  { %s705_s28 = scalar_lea.vmem %s45_s18, 2048  ;;  %p710_p4 = scmp.lt.s32.totalorder %s45_s18, %s45_s18 }
   0xb   :  { %p706_p3 = scmp.ne.s32.totalorder %s45_s18, %s705_s28  ;;  %p711_p5 = scmp.lt.s32.totalorder %s705_s28, %s705_s28 }
   0xd   :  { %p712_p6 = por %p711_p5, %p710_p4 }
   0xf   :  { %p713_p7 = pnand %p712_p6, %p706_p3 }
  0x11   :  { %716 = shalt.err (!%p713_p7)
}
  0x12   :  { %s791_s29 = smov 128   ;;  %s792_s30 = smov 8  }
  0x13   :  { %50 = dma.hbm_to_vmem [thread:$0]  %s982_s5, 2048, %s45_s18, [#allocation6], %s791_s29, %s791_s29, %s792_s30  }
  0x14   :  { %s717_s16 = scalar_lea.hbm %s978_s1, 2048 }
  0x15   :  { %p718_p8 = scmp.ne.s32.totalorder %s978_s1, %s717_s16  ;;  %p721_p9 = scmp.lt.u32.totalorder %s717_s16, %s978_s1 }
  0x17   :  { %p723_p10 = pnand %p721_p9, %p718_p8 }
  0x19   :  { %726 = shalt.err (!%p723_p10)
}
  0x1a   :  { %s727_s23 = scalar_lea.vmem %s858_s20, 2048  ;;  %p732_p12 = scmp.lt.s32.totalorder %s858_s20, %s858_s20 }
  0x1b   :  { %p728_p11 = scmp.ne.s32.totalorder %s858_s20, %s727_s23  ;;  %p733_p13 = scmp.lt.s32.totalorder %s727_s23, %s727_s23 }
  0x1d   :  { %p734_p0 = por %p733_p13, %p732_p12 }
  0x1f   :  { %p735_p1 = pnand %p734_p0, %p728_p11 }
  0x21   :  { %738 = shalt.err (!%p735_p1)
}
  0x22   :  { %32 = dma.hbm_to_vmem [thread:$0]  %s978_s1, 2048, %s858_s20, [#allocation3], %s791_s29, %s791_s29, %s792_s30  }
  0x23   :  { %s793_s24 = smov [#allocation7]   ;;  %s739_s28 = scalar_lea.hbm %s986_s9, 2048 }
  0x24   :  { %s62_s25 = sshll.u32 %s793_s24, 4  ;;  %p740_p2 = scmp.ne.s32.totalorder %s986_s9, %s739_s28  ;;  %s63_s25 = int_to_ptr.vmem [resolvable:$true] %s62_s25 }
  0x25   :  { %p743_p3 = scmp.lt.u32.totalorder %s739_s28, %s986_s9 }
  0x27   :  { %p745_p4 = pnand %p743_p3, %p740_p2 }
  0x29   :  { %748 = shalt.err (!%p745_p4)
}
  0x2a   :  { %s749_s16 = scalar_lea.vmem %s63_s25, 2048  ;;  %p754_p6 = scmp.lt.s32.totalorder %s63_s25, %s63_s25 }
  0x2b   :  { %p750_p5 = scmp.ne.s32.totalorder %s63_s25, %s749_s16  ;;  %p755_p7 = scmp.lt.s32.totalorder %s749_s16, %s749_s16 }
  0x2d   :  { %p756_p8 = por %p755_p7, %p754_p6 }
  0x2f   :  { %p757_p9 = pnand %p756_p8, %p750_p5 }
  0x31   :  { %760 = shalt.err (!%p757_p9)
}
  0x32   :  { %68 = dma.hbm_to_vmem [thread:$0]  %s986_s9, 2048, %s63_s25, [#allocation6], %s791_s29, %s791_s29, %s792_s30  }
  0x33   :  { %783 = dma.done.wait [#allocation3], 2048  }
  0x34   :  { %784 = vsyncadd [#allocation3], 4294965248 }
  0x35   :  { %785 = dma.done.wait [#allocation6], 4096  }
  0x36   :  { %786 = vsyncadd [#allocation6], 4294963200  ;;  %v794_v0 = vmov 0.0|0.0   ;;  %vm795_vm0 = vmmov 0   ;;  %v796_v1 = vmov 0.0   ;;  %v81_v2 = vld [vmem:[#allocation2] sm:$0xff]  ;;  %v178_v37 = vlaneseq }
  0x37   :  { %610 = vmatprep.subr.bf16.mxu0 %v794_v0  ;;  %537 = vmatprep.mubr.msk.f32.mxu0 %vm795_vm0, %v796_v1  ;;  %v82_v3 = vld [vmem:[#allocation2 + $0x8] sm:$0xff]  ;;  %v83_v4 = vld [vmem:[#allocation2 + $0x10] sm:$0xff]  ;;  %v84_v6 = vld [vmem:[#allocation2 + $0x18] sm:$0xff]  ;;  %s797_s25 = smov [#allocation8]  }
  0x38   :  { %634 = vmatprep.subr.bf16.mxu1 %v794_v0  ;;  %572 = vmatprep.mubr.msk.f32.mxu1 %vm795_vm0, %v796_v1  ;;  %v611_v5 = vpack.c.bf16 %v82_v3, %v81_v2  ;;  %v614_v7 = vpack.c.bf16 %v84_v6, %v83_v4  ;;  %v85_v8 = vld [vmem:[#allocation2 + $0x20] sm:$0xff]  ;;  %v86_v9 = vld [vmem:[#allocation2 + $0x28] sm:$0xff]  ;;  %v87_v11 = vld [vmem:[#allocation2 + $0x30] sm:$0xff]  ;;  %v931_v38 = vand.u32 127, %v178_v37  ;;  %s437_s26 = sshll.u32 %s797_s25, 4  ;;  %s438_s26 = int_to_ptr.vmem [resolvable:$true] %s437_s26 }
  0x39   :  { %v617_v10 = vpack.c.bf16 %v86_v9, %v85_v8  ;;  %v88_v12 = vld [vmem:[#allocation2 + $0x38] sm:$0xff]  ;;  %v89_v14 = vld [vmem:[#allocation2 + $0x40] sm:$0xff]  ;;  %v90_v15 = vld [vmem:[#allocation2 + $0x48] sm:$0xff]  ;;  %p766_p11 = scmp.lt.s32.totalorder %s438_s26, %s438_s26 }
  0x3a   :  { %612 = vmatpush3.bf16.msra.mxu0 %v611_v5  ;;  %v620_v13 = vpack.c.bf16 %v88_v12, %v87_v11  ;;  %v623_v16 = vpack.c.bf16 %v90_v15, %v89_v14  ;;  %v91_v17 = vld [vmem:[#allocation2 + $0x50] sm:$0xff]  ;;  %v92_v18 = vld [vmem:[#allocation2 + $0x58] sm:$0xff]  ;;  %v93_v20 = vld [vmem:[#allocation2 + $0x60] sm:$0xff]  ;;  %vm180_vm1 = vcmp.lt.s32.totalorder %v931_v38, 64  ;;  %vm307_vm3 = vcmp.lt.s32.totalorder %v931_v38, 32 }
  0x3b   :  { %613 = vmatprep.subr.bf16.mxu0 %v794_v0  ;;  %v626_v19 = vpack.c.bf16 %v92_v18, %v91_v17  ;;  %v94_v21 = vld [vmem:[#allocation2 + $0x68] sm:$0xff]  ;;  %v95_v23 = vld [vmem:[#allocation2 + $0x70] sm:$0xff]  ;;  %v96_v24 = vld [vmem:[#allocation2 + $0x78] sm:$0xff] }
  0x3c   :  { %v629_v22 = vpack.c.bf16 %v94_v21, %v93_v20  ;;  %v632_v25 = vpack.c.bf16 %v96_v24, %v95_v23  ;;  %v80_v26 = vld [vmem:[%s977_s0] sm:$0xff]  ;;  %v211_v32 = vld [vmem:[#allocation5 + $0x8] sm:$0xff]  ;;  %v212_v33 = vld [vmem:[#allocation5 + $0x10] sm:$0xff] }
  0x3d   :  { %v447_v27 = vld [vmem:[%s979_s2] ss:$0 sm:$0xff]  ;;  %v213_v35 = vld [vmem:[#allocation5 + $0x18] sm:$0xff]  ;;  %v215_v45 = vld [vmem:[#allocation5 + $0x28] sm:$0xff] }
  0x3e   :  { %615 = vmatpush3.bf16.msra.mxu0 %v614_v7  ;;  %v210_v31 = vld [vmem:[#allocation5] sm:$0xff]  ;;  %v638_v36 = vpack.c.bf16 %v213_v35, %v212_v33  ;;  %v216_v47 = vld [vmem:[#allocation5 + $0x30] sm:$0xff]  ;;  %v217_v48 = vld [vmem:[#allocation5 + $0x38] sm:$0xff] }
  0x3f   :  { %616 = vmatprep.subr.bf16.mxu0 %v794_v0  ;;  %v635_v34 = vpack.c.bf16 %v211_v32, %v210_v31  ;;  %v214_v44 = vld [vmem:[#allocation5 + $0x20] sm:$0xff]  ;;  %v644_v49 = vpack.c.bf16 %v217_v48, %v216_v47  ;;  %v219_v51 = vld [vmem:[#allocation5 + $0x48] sm:$0xff]  ;;  %v220_v53 = vld [vmem:[#allocation5 + $0x50] sm:$0xff] }
  0x40   :  { %v641_v46 = vpack.c.bf16 %v215_v45, %v214_v44  ;;  %v218_v50 = vld [vmem:[#allocation5 + $0x40] sm:$0xff]  ;;  %v221_v54 = vld [vmem:[#allocation5 + $0x58] sm:$0xff]  ;;  %v223_v57 = vld [vmem:[#allocation5 + $0x68] sm:$0xff] }
  0x41   :  { %636 = vmatpush3.bf16.msra.mxu1 %v635_v34  ;;  %v647_v52 = vpack.c.bf16 %v219_v51, %v218_v50  ;;  %v650_v55 = vpack.c.bf16 %v221_v54, %v220_v53  ;;  %v222_v56 = vld [vmem:[#allocation5 + $0x60] sm:$0xff]  ;;  %v224_v59 = vld [vmem:[#allocation5 + $0x70] sm:$0xff]  ;;  %v225_v60 = vld [vmem:[#allocation5 + $0x78] sm:$0xff] }
  0x42   :  { %618 = vmatpush3.bf16.msra.mxu0 %v617_v10  ;;  %637 = vmatprep.subr.bf16.mxu1 %v794_v0  ;;  %v653_v58 = vpack.c.bf16 %v223_v57, %v222_v56  ;;  %v656_v61 = vpack.c.bf16 %v225_v60, %v224_v59  ;;  %v448_v3 = vld [vmem:[%s980_s3] ss:$0 sm:$0xff]  ;;  %v338_v15 = vld [vmem:[#allocation7 + $0x8] sm:$0xff]  ;;  %v340_v18 = vld [vmem:[#allocation7 + $0x18] sm:$0xff] }
  0x43   :  { %619 = vmatprep.subr.bf16.mxu0 %v794_v0  ;;  %v449_v5 = vld [vmem:[%s981_s4] ss:$0 sm:$0xff]  ;;  %v346_v32 = vld [vmem:[#allocation7 + $0x48] sm:$0xff]  ;;  %v347_v34 = vld [vmem:[#allocation7 + $0x50] sm:$0xff] }
  0x44   :  { %v450_v10 = vld [vmem:[%s983_s6] ss:$0 sm:$0xff]  ;;  %v348_v35 = vld [vmem:[#allocation7 + $0x58] sm:$0xff]  ;;  %v350_v38 = vld [vmem:[#allocation7 + $0x68] sm:$0xff] }
  0x45   :  { %639 = vmatpush3.bf16.msra.mxu1 %v638_v36  ;;  %v337_v14 = vld [vmem:[#allocation7] sm:$0xff]  ;;  %v674_v36 = vpack.c.bf16 %v348_v35, %v347_v34 }
  0x46   :  { %621 = vmatpush3.bf16.msra.mxu0 %v620_v13  ;;  %640 = vmatprep.subr.bf16.mxu1 %v794_v0  ;;  %v659_v17 = vpack.c.bf16 %v338_v15, %v337_v14  ;;  %v345_v31 = vld [vmem:[#allocation7 + $0x40] sm:$0xff] }
  0x47   :  { %622 = vmatprep.subr.bf16.mxu0 %v794_v0  ;;  %v671_v33 = vpack.c.bf16 %v346_v32, %v345_v31  ;;  %v349_v37 = vld [vmem:[#allocation7 + $0x60] sm:$0xff] }
  0x48   :  { %v451_v47 = vld [vmem:[%s984_s7] ss:$0 sm:$0xff]  ;;  %s761_s7 = scalar_lea.vmem %s438_s26, 128 }
  0x49   :  { %642 = vmatpush3.bf16.msra.mxu1 %v641_v46  ;;  %v453_v53 = vld [vmem:[%s987_s10] ss:$0 sm:$0xff]  ;;  %p762_p10 = scmp.ne.s32.totalorder %s438_s26, %s761_s7  ;;  %p767_p12 = scmp.lt.s32.totalorder %s761_s7, %s761_s7 }
  0x4a   :  { %624 = vmatpush3.bf16.msra.mxu0 %v623_v16  ;;  %643 = vmatprep.subr.bf16.mxu1 %v794_v0  ;;  %v339_v16 = vld [vmem:[#allocation7 + $0x10] sm:$0xff] }
  0x4b   :  { %625 = vmatprep.subr.bf16.mxu0 %v794_v0  ;;  %p768_p13 = por %p767_p12, %p766_p11 }
  0x4d   :  { %645 = vmatpush3.bf16.msra.mxu1 %v644_v49  ;;  %v452_v49 = vld [vmem:[%s985_s8] ss:$0 sm:$0xff]  ;;  %p769_p0 = pnand %p768_p13, %p762_p10 }
  0x4e   :  { %627 = vmatpush3.bf16.msra.mxu0 %v626_v19  ;;  %646 = vmatprep.subr.bf16.mxu1 %v794_v0  ;;  %v662_v19 = vpack.c.bf16 %v340_v18, %v339_v16 }
  0x4f   :  { %628 = vmatprep.subr.bf16.mxu0 %v794_v0 }
  0x51   :  { %648 = vmatpush3.bf16.msra.mxu1 %v647_v52 }
  0x52   :  { %630 = vmatpush3.bf16.msra.mxu0 %v629_v22  ;;  %649 = vmatprep.subr.bf16.mxu1 %v794_v0 }
  0x53   :  { %631 = vmatprep.subr.bf16.mxu0 %v794_v0 }
  0x55   :  { %651 = vmatpush3.bf16.msra.mxu1 %v650_v55 }
  0x56   :  { %633 = vmatpush3.bf16.msra.mxu0 %v632_v25  ;;  %652 = vmatprep.subr.bf16.mxu1 %v794_v0  ;;  %v341_v25 = vld [vmem:[#allocation7 + $0x20] sm:$0xff] }
  0x57   :  { %658 = vmatprep.subr.bf16.mxu0 %v794_v0 }
  0x59   :  { %538 = vmatmul.mubr.f32.vlgmr.msra.gmra.mrb[0].mxu0 %v80_v26  ;;  %654 = vmatpush3.bf16.msra.mxu1 %v653_v58  ;;  %v342_v26 = vld [vmem:[#allocation7 + $0x28] sm:$0xff] }
  0x5a   :  { %607 = vmatprep.mubr.msk.f32.mxu0 %vm795_vm0, %v796_v1  ;;  %655 = vmatprep.subr.bf16.mxu1 %v794_v0 }
  0x5b   :  { %660 = vmatpush3.bf16.msra.mxu0 %v659_v17 }
  0x5c   :  { %661 = vmatprep.subr.bf16.mxu0 %v794_v0 }
  0x5d   :  { %657 = vmatpush3.bf16.msra.mxu1 %v656_v61 }
  0x5f   :  { %663 = vmatpush3.bf16.msra.mxu0 %v662_v19 }
  0x60   :  { %664 = vmatprep.subr.bf16.mxu0 %v794_v0 }
 0x12c   :  { %v170_v28 = vpop.f32.mrb[0].mxu0 }
 0x12d   :  { %v171_v29 = vadd.f32 %v447_v27, %v170_v28  ;;  %v539_v30 = vpop.f32.mrb[1].mxu0  ;;  %v665_v27 = vpack.c.bf16 %v342_v26, %v341_v25  ;;  %v343_v28 = vld [vmem:[#allocation7 + $0x30] sm:$0xff] }
 0x12f   :  { %174 = vadd.xlane.f32.xlu0 %v171_v29  ;;  %666 = vmatpush3.bf16.msra.mxu0 %v665_v27 }
 0x130   :  { %667 = vmatprep.subr.bf16.mxu0 %v794_v0 }
 0x1bc   :  { %v175_v39 = vpop.xlane.xlu0 %174 }
 0x1bd   :  { %v176_v40 = vmul.f32 0.015625, %v175_v39  ;;  %v677_v39 = vpack.c.bf16 %v350_v38, %v349_v37 }
 0x1bf   :  { %v177_v41 = vsub.f32 %v171_v29, %v176_v40  ;;  %v344_v29 = vld [vmem:[#allocation7 + $0x38] sm:$0xff]  ;;  %v351_v40 = vld [vmem:[#allocation7 + $0x70] sm:$0xff] }
 0x1c0   :  { %v668_v30 = vpack.c.bf16 %v344_v29, %v343_v28 }
 0x1c1   :  { %v183_v42 = vsel %vm180_vm1, %v177_v41, 0.0  ;;  %v352_v41 = vld [vmem:[#allocation7 + $0x78] sm:$0xff] }
 0x1c2   :  { %v184_v43 = vmul.f32 %v183_v42, %v183_v42  ;;  %669 = vmatpush3.bf16.msra.mxu0 %v668_v30 }
 0x1c3   :  { %670 = vmatprep.subr.bf16.mxu0 %v794_v0 }
 0x1c4   :  { %185 = vadd.xlane.f32.xlu0 %v184_v43 }
 0x1c6   :  { %672 = vmatpush3.bf16.msra.mxu0 %v671_v33 }
 0x1c7   :  { %673 = vmatprep.subr.bf16.mxu0 %v794_v0 }
 0x1ca   :  { %675 = vmatpush3.bf16.msra.mxu0 %v674_v36 }
 0x1cb   :  { %676 = vmatprep.subr.bf16.mxu0 %v794_v0 }
 0x1ce   :  { %678 = vmatpush3.bf16.msra.mxu0 %v677_v39 }
 0x1cf   :  { %679 = vmatprep.subr.bf16.mxu0 %v794_v0 }
 0x251   :  { %v186_v62 = vpop.xlane.xlu0 %185 }
 0x252   :  { %v187_v63 = vmul.f32 0.015625, %v186_v62 }
 0x254   :  { %v188_v1 = vadd.f32 1e-05, %v187_v63 }
 0x256   :  { %691 = vrsqrt.f32 %v188_v1 }
 0x260   :  { %v692_v2 = vpop.eup %691 }
 0x261   :  { %v190_v4 = vmul.f32 %v692_v2, %v183_v42  ;;  %v680_v42 = vpack.c.bf16 %v352_v41, %v351_v40 }
 0x263   :  { %v198_v6 = vmul.f32 %v448_v3, %v190_v4  ;;  %681 = vmatpush3.bf16.msra.mxu0 %v680_v42 }
 0x265   :  { %v206_v7 = vadd.f32 %v449_v5, %v198_v6 }
 0x267   :  { %vm207_vm2 = vcmp.gt.f32.partialorder %v206_v7, 0.0  ;;  %v208_v8 = vmul.f32 0.01, %v206_v7 }
 0x269   :  { %v209_v9 = vsel %vm207_vm2, %v206_v7, %v208_v8 }
 0x26a   :  { %573 = vmatmul.mubr.f32.vlgmr.msra.gmra.mrb[0].mxu1 %v209_v9 }
 0x33d   :  { %v299_v11 = vpop.f32.mrb[0].mxu1 }
 0x33e   :  { %v300_v12 = vadd.f32 %v450_v10, %v299_v11  ;;  %v574_v13 = vpop.f32.mrb[1].mxu1 }
 0x340   :  { %303 = vadd.xlane.f32.xlu1 %v300_v12 }
 0x3cd   :  { %v304_v20 = vpop.xlane.xlu1 %303 }
 0x3ce   :  { %v305_v21 = vmul.f32 0.03125, %v304_v20 }
 0x3d0   :  { %v306_v22 = vsub.f32 %v300_v12, %v305_v21 }
 0x3d2   :  { %v310_v23 = vsel %vm307_vm3, %v306_v22, 0.0 }
 0x3d3   :  { %v311_v24 = vmul.f32 %v310_v23, %v310_v23 }
 0x3d5   :  { %312 = vadd.xlane.f32.xlu1 %v311_v24 }
 0x462   :  { %v313_v43 = vpop.xlane.xlu1 %312 }
 0x463   :  { %v314_v44 = vmul.f32 0.03125, %v313_v43 }
 0x465   :  { %v315_v45 = vadd.f32 1e-05, %v314_v44 }
 0x467   :  { %693 = vrsqrt.f32 %v315_v45 }
 0x471   :  { %v694_v46 = vpop.eup %693 }
 0x472   :  { %v317_v48 = vmul.f32 %v694_v46, %v310_v23 }
 0x474   :  { %v325_v50 = vmul.f32 %v451_v47, %v317_v48 }
 0x476   :  { %v333_v51 = vadd.f32 %v452_v49, %v325_v50 }
 0x478   :  { %vm334_vm4 = vcmp.gt.f32.partialorder %v333_v51, 0.0  ;;  %v335_v52 = vmul.f32 0.01, %v333_v51 }
 0x47a   :  { %v336_v0 = vsel %vm334_vm4, %v333_v51, %v335_v52 }
 0x47b   :  { %608 = vmatmul.mubr.f32.vlgmr.msra.gmra.mrb[2].mxu0 %v336_v0 }
 0x54e   :  { %v426_v54 = vpop.f32.mrb[2].mxu0 }
 0x54f   :  { %v427_v55 = vadd.f32 %v453_v53, %v426_v54  ;;  %v609_v56 = vpop.f32.mrb[3].mxu0 }
 0x551   :  { %430 = vst [vmem:[#allocation8] sm:$0xff] %v427_v55 }
 0x552   :  { %772 = shalt.err (!%p769_p0)
}
 0x553   :  { %s773_s28 = scalar_lea.hbm %s988_s11, 128 }
 0x554   :  { %p774_p1 = scmp.ne.s32.totalorder %s988_s11, %s773_s28  ;;  %p777_p2 = scmp.lt.u32.totalorder %s773_s28, %s988_s11 }
 0x556   :  { %p779_p3 = pnand %p777_p2, %p774_p1 }
 0x558   :  { %782 = shalt.err (!%p779_p3)
}
 0x559   :  { %440 = dma.vmem_to_hbm [thread:$0]  %s438_s26, 128, %s988_s11, [#allocation4]  }
 0x55a   :  { %787 = dma.done.wait [#allocation4], 128  }
 0x55b   :  { %788 = vsyncadd [#allocation4], 4294967168 }
 0x55c   :  { %444 = vsyncpa [#allocation3], 1 }
 0x55d   :  { %445 = vsyncpa [#allocation6], 1 }
 0x55e   :  { %446 = vsyncpa [#allocation4], 1 }

</bundles_post_ra>
